<compile_context>
chip_gen: v5e
topology: v5e:2x2
jax: 0.10.0
libtpu: 0.0.40
codegen_flags: <defaults>
</compile_context>

<pallas_src>
import functools
import math

import jax
import jax.numpy as jnp
from jax import lax
from jax.experimental import pallas as pl
from jax.experimental.pallas import tpu as pltpu

_NEG_INF = -1e30                        # finite "minus inf": avoids inf-inf NaN
_VMEM_LIMIT_BYTES = 32 * 1024 * 1024


def _pick_block(total, candidates):
    """Largest candidate that evenly divides `total` (else the full extent)."""
    for c in candidates:
        if c <= total and total % c == 0:
            return c
    return total


# ---------------------------------------------------------------------------
# 1x1 convolution: y[r, :] = x[r, :] @ W + b, row-tiled over flattened (N*S).
# ---------------------------------------------------------------------------
def _conv1x1_kernel(x_ref, w_ref, b_ref, o_ref):
    # x: (row_tile, Cin), w: (Cin, Cout), b: (1, Cout)
    y = jnp.dot(x_ref[...], w_ref[...], preferred_element_type=jnp.float32)
    o_ref[...] = (y + b_ref[...]).astype(o_ref.dtype)


def conv1x1(x, w, b, row_tile=None):
    """Pointwise conv: x (..., Cin) @ w (Cin, Cout) + b (1, Cout)."""
    cin = x.shape[-1]
    cout = w.shape[-1]
    lead = x.shape[:-1]
    rows = math.prod(lead)
    x2 = x.reshape(rows, cin)
    rt = row_tile or _pick_block(rows, (512, 256, 128, 64, 32, 16, 8))
    out = pl.pallas_call(
        _conv1x1_kernel,
        out_shape=jax.ShapeDtypeStruct((rows, cout), jnp.float32),
        grid=(rows // rt,),
        in_specs=[
            pl.BlockSpec((rt, cin), lambda i: (i, 0)),
            pl.BlockSpec((cin, cout), lambda i: (0, 0)),   # stays resident
            pl.BlockSpec((1, cout), lambda i: (0, 0)),     # stays resident
        ],
        out_specs=pl.BlockSpec((rt, cout), lambda i: (i, 0)),
        compiler_params=pltpu.CompilerParams(
            dimension_semantics=("parallel",),
            vmem_limit_bytes=_VMEM_LIMIT_BYTES),
    )(x2, w, b)
    return out.reshape(*lead, cout)


# ---------------------------------------------------------------------------
# Flash-style causal multi-head attention with fused output projection.
# Grid: (batch, q_tile, kv_tile); all heads of one batch handled per step.
# q is expected pre-scaled by 1/sqrt(dk) (folded into the q projection).
# ---------------------------------------------------------------------------
def _flash_causal_attn_kernel(q_ref, k_ref, v_ref, pw_ref, pb_ref, o_ref,
                              m_ref, l_ref, acc_ref,
                              *, tq, tk, nh, dv, oc, mask_center):
    qi = pl.program_id(1)
    ki = pl.program_id(2)
    num_kv = pl.num_programs(2)

    @pl.when(ki == 0)
    def _init():
        m_ref[...] = jnp.full(m_ref.shape, _NEG_INF, m_ref.dtype)
        l_ref[...] = jnp.zeros(l_ref.shape, l_ref.dtype)
        acc_ref[...] = jnp.zeros(acc_ref.shape, acc_ref.dtype)

    q_start = qi * tq
    k_start = ki * tk
    # valid(i, j) <=> j <= i - mask_center
    not_skipped = k_start <= q_start + (tq - 1) - mask_center   # any valid entry
    needs_mask = k_start + (tk - 1) > q_start - mask_center     # straddles diag

    @pl.when(not_skipped)
    def _compute():
        q = q_ref[...]                                      # (nh, tq, dk) scaled
        k = k_ref[...]                                      # (nh, tk, dk)
        v = v_ref[...]                                      # (nh, tk, dv)
        s = jnp.einsum('hqd,hkd->hqk', q, k,
                       preferred_element_type=jnp.float32)  # (nh, tq, tk)

        def _accumulate(scores, p_mask=None):
            m_prev = m_ref[...]                                           # (nh,tq,1)
            m_new = jnp.maximum(m_prev, jnp.max(scores, axis=-1, keepdims=True))
            alpha = jnp.exp(m_prev - m_new)
            p = jnp.exp(scores - m_new)
            if p_mask is not None:
                p = jnp.where(p_mask, p, 0.0)       # exact zeros for masked cols
            l_ref[...] = alpha * l_ref[...] + jnp.sum(p, axis=-1, keepdims=True)
            acc_ref[...] = alpha * acc_ref[...] + jnp.einsum(
                'hqk,hkd->hqd', p, v, preferred_element_type=jnp.float32)
            m_ref[...] = m_new

        @pl.when(needs_mask)
        def _diagonal_tile():
            row = lax.broadcasted_iota(jnp.int32, (tq, tk), 0) + q_start
            col = lax.broadcasted_iota(jnp.int32, (tq, tk), 1) + k_start
            valid = (col <= row - mask_center)[None]        # (1, tq, tk)
            _accumulate(jnp.where(valid, s, _NEG_INF), p_mask=valid)

        @pl.when(jnp.logical_not(needs_mask))
        def _full_tile():
            _accumulate(s)

    @pl.when(ki == num_kv - 1)
    def _finalize():
        l = l_ref[...]
        # One exact divide per (head, row); guard fully-masked rows
        # (mask_center=True, pixel 0), which PyTorch re-masks to exactly 0.
        inv = jnp.where(l > 0.0, 1.0 / l, 0.0)
        out = acc_ref[...] * inv                            # (nh, tq, dv)
        # Fused output projection: sum_h out[h] @ p_w[h] + p_b  -> (tq, oc).
        y = jnp.dot(out[0], pw_ref[0], preferred_element_type=jnp.float32)
        for hh in range(1, nh):
            y = y + jnp.dot(out[hh], pw_ref[hh],
                            preferred_element_type=jnp.float32)
        o_ref[...] = (y + pb_ref[...]).astype(o_ref.dtype)


def causal_attention_proj(q, k, v, p_w, p_b, mask_center, *, tq=None, tk=None):
    """q,k: (N, nh, S, dk) (q pre-scaled); v: (N, nh, S, dv);
    p_w: (nh, dv, oc); p_b: (1, oc) -> projected output (N, S, oc)."""
    n, nh, s, dk = q.shape
    dv = v.shape[-1]
    oc = p_w.shape[-1]
    tq = tq or _pick_block(s, (128, 256, 512, 64, 32, 16, 8))
    tk = tk or _pick_block(s, (128, 256, 512, 64, 32, 16, 8))
    mc = int(mask_center)

    def kv_index_map(b, qi, ki):
        # Clamp the kv block index so tiles strictly above the causal diagonal
        # reuse the already-resident block -> Pallas elides their DMA entirely.
        last_valid = jnp.maximum(qi * tq + (tq - 1 - mc), 0) // tk
        return (b, 0, jnp.minimum(ki, last_valid), 0)

    kern = functools.partial(
        _flash_causal_attn_kernel, tq=tq, tk=tk, nh=nh, dv=dv, oc=oc,
        mask_center=mc)
    return pl.pallas_call(
        kern,
        out_shape=jax.ShapeDtypeStruct((n, s, oc), jnp.float32),
        grid=(n, s // tq, s // tk),
        in_specs=[
            pl.BlockSpec((None, nh, tq, dk), lambda b, qi, ki: (b, 0, qi, 0)),
            pl.BlockSpec((None, nh, tk, dk), kv_index_map),
            pl.BlockSpec((None, nh, tk, dv), kv_index_map),
            pl.BlockSpec((nh, dv, oc), lambda b, qi, ki: (0, 0, 0)),  # resident
            pl.BlockSpec((1, oc), lambda b, qi, ki: (0, 0)),          # resident
        ],
        out_specs=pl.BlockSpec((None, tq, oc), lambda b, qi, ki: (b, qi, 0)),
        scratch_shapes=[
            pltpu.VMEM((nh, tq, 1), jnp.float32),    # running max m
            pltpu.VMEM((nh, tq, 1), jnp.float32),    # running sum l
            pltpu.VMEM((nh, tq, dv), jnp.float32),   # output accumulator
        ],
        compiler_params=pltpu.CompilerParams(
            dimension_semantics=("parallel", "parallel", "arbitrary"),
            vmem_limit_bytes=_VMEM_LIMIT_BYTES),
    )(q, k, v, p_w, p_b)


# ---------------------------------------------------------------------------
# Module wrapper (parameter setup + layout glue in plain JAX).
# ---------------------------------------------------------------------------
class CausalAttentionPallas:
    def __init__(self, in_channels, n_heads=1, embed_channels=None,
                 out_channels=None, mask_center=False, extra_input_channels=0,
                 key=None):
        self.n_heads = n_heads
        self.embed_channels = embed_channels or in_channels
        self.out_channels = out_channels or in_channels
        self.mask_center = mask_center

        kq, kkv, kp = jax.random.split(key, 3)

        def init_conv(k, cin, cout):
            kw, kb = jax.random.split(k)
            bound = 1.0 / math.sqrt(cin)
            w = jax.random.uniform(kw, (cin, cout), jnp.float32, -bound, bound)
            b = jax.random.uniform(kb, (1, cout), jnp.float32, -bound, bound)
            return w, b

        self.q_w, self.q_b = init_conv(kq, in_channels, self.embed_channels)
        self.kv_w, self.kv_b = init_conv(
            kkv, in_channels + extra_input_channels,
            self.embed_channels + self.out_channels)
        self.p_w, self.p_b = init_conv(kp, self.out_channels, self.out_channels)

    def __call__(self, x, extra_x=None):
        # x: (N, C, H, W) -- same NCHW convention as the PyTorch module.
        n, _, h, w = x.shape
        s = h * w
        nh = self.n_heads
        ec = self.embed_channels
        oc = self.out_channels
        dk = ec // nh
        dv = oc // nh
        scale = 1.0 / math.sqrt(dk)

        def to_seq(t):      # NCHW -> (N, S, C)
            return t.reshape(t.shape[0], t.shape[1], s).transpose(0, 2, 1)

        def to_mh(t, d):    # (N, S, C) -> (N, nh, S, d)
            return t.reshape(n, s, nh, d).transpose(0, 2, 1, 3)

        x_seq = to_seq(x)
        # Fold 1/sqrt(dk) into the q projection (tiny one-off weight scale)
        # so the attention kernel never rescales q per kv tile.
        q_w = self.q_w * scale
        q_b = self.q_b * scale
        if extra_x is None and self.kv_w.shape[0] == self.q_w.shape[0]:
            # Fused q/kv projection: x is streamed from HBM once.
            w_f = jnp.concatenate([q_w, self.kv_w], axis=1)
            b_f = jnp.concatenate([q_b, self.kv_b], axis=1)
            qkv = conv1x1(x_seq, w_f, b_f)                 # (N, S, 2*ec + oc)
            q_seq = qkv[..., :ec]
            k_seq = qkv[..., ec:2 * ec]
            v_seq = qkv[..., 2 * ec:]
        else:
            q_seq = conv1x1(x_seq, q_w, q_b)
            if extra_x is not None:
                x_seq = jnp.concatenate([x_seq, to_seq(extra_x)], axis=-1)
            kv = conv1x1(x_seq, self.kv_w, self.kv_b)
            k_seq = kv[..., :ec]
            v_seq = kv[..., ec:]

        q = to_mh(q_seq, dk)
        k = to_mh(k_seq, dk)
        v = to_mh(v_seq, dv)

        # Attention + fused output projection -> (N, S, oc).
        p_w_heads = self.p_w.reshape(nh, dv, oc)
        y_seq = causal_attention_proj(q, k, v, p_w_heads, self.p_b,
                                      self.mask_center)
        return y_seq.transpose(0, 2, 1).reshape(n, oc, h, w)


# ---------------------------------------------------------------------------
# Pure-JAX reference (mirrors the PyTorch forward) for correctness checks.
# ---------------------------------------------------------------------------
def reference_forward(mod, x, extra_x=None):
    n, _, h, w = x.shape
    s = h * w
    nh = mod.n_heads

    def to_seq(t):
        return t.reshape(t.shape[0], t.shape[1], s).transpose(0, 2, 1)

    def to_multihead(t):
        return t.reshape(n, s, nh, t.shape[-1] // nh).transpose(0, 2, 1, 3)

    x_seq = to_seq(x)
    q = to_multihead(x_seq @ mod.q_w + mod.q_b)
    if extra_x is not None:
        x_seq = jnp.concatenate([x_seq, to_seq(extra_x)], axis=-1)
    kv = x_seq @ mod.kv_w + mod.kv_b
    k = to_multihead(kv[..., :mod.embed_channels])
    v = to_multihead(kv[..., mod.embed_channels:])

    mask = jnp.tril(jnp.ones((s, s)), k=-int(mod.mask_center))
    scores = q @ jnp.swapaxes(k, -1, -2) / jnp.sqrt(jnp.float32(k.shape[-1]))
    scores = jnp.where(mask == 0, -jnp.inf, scores)
    attn = jax.nn.softmax(scores, axis=-1)
    attn = jnp.where(mask == 0, 0.0, attn)
    o = attn @ v
    o_seq = o.transpose(0, 2, 1, 3).reshape(n, s, mod.out_channels)
    y = o_seq @ mod.p_w + mod.p_b
    return y.transpose(0, 2, 1).reshape(n, mod.out_channels, h, w)


if __name__ == "__main__":
    key = jax.random.PRNGKey(0)
    k_param, k_param2, k_x, k_x2 = jax.random.split(key, 4)

    # Config 1: multi-head, multi-tile (S = 16*16 = 256 -> 2x2 q/kv tiles,
    # exercising tile/DMA skipping, the masked diagonal tile and full tiles).
    N, C, H, W = 2, 4, 16, 16
    module = CausalAttentionPallas(
        in_channels=C, n_heads=2, embed_channels=8, out_channels=4,
        mask_center=False, extra_input_channels=0, key=k_param)
    x = jax.random.normal(k_x, (N, C, H, W), jnp.float32)
    out = jax.block_until_ready(module(x))
    ref = reference_forward(module, x)
    assert out.shape == (N, 4, H, W)
    assert jnp.allclose(out, ref, atol=5e-5, rtol=5e-5), (
        "mismatch vs reference (mask_center=False), max |diff| = "
        f"{jnp.max(jnp.abs(out - ref))}")

    # Config 2: mask_center=True exercises the fully-masked first pixel.
    N2, C2, H2, W2 = 2, 4, 8, 8
    module2 = CausalAttentionPallas(
        in_channels=C2, n_heads=2, embed_channels=8, out_channels=4,
        mask_center=True, extra_input_channels=0, key=k_param2)
    x2 = jax.random.normal(k_x2, (N2, C2, H2, W2), jnp.float32)
    out2 = jax.block_until_ready(module2(x2))
    ref2 = reference_forward(module2, x2)
    assert not jnp.any(jnp.isnan(out2))
    assert jnp.allclose(out2, ref2, atol=5e-5, rtol=5e-5), (
        "mismatch vs reference (mask_center=True), max |diff| = "
        f"{jnp.max(jnp.abs(out2 - ref2))}")

    print("KERNEL_OK")
</pallas_src>

<mosaic_0001>
module attributes {stable_mosaic.version = 11 : i64} {
  func.func @_conv1x1_kernel(%arg0: i32, %arg1: memref<512x4xf32, #tpu.memory_space<vmem>>, %arg2: memref<4x20xf32, #tpu.memory_space<vmem>>, %arg3: memref<1x20xf32, #tpu.memory_space<vmem>>, %arg4: memref<512x20xf32, #tpu.memory_space<vmem>>) attributes {dimension_semantics = [#tpu.dimension_semantics<parallel>], iteration_bounds = array<i64: 1>, scalar_prefetch = 0 : i64, scratch_operands = 0 : i64, tpu.core_type = #tpu.core_type<tc>, window_params = [{transform_indices = @transform_0, window_bounds = array<i64: 512, 4>}, {pipeline_mode = #tpu.pipeline_mode<synchronous>, transform_indices = @transform_1, window_bounds = array<i64: 4, 20>}, {pipeline_mode = #tpu.pipeline_mode<synchronous>, transform_indices = @transform_2, window_bounds = array<i64: 1, 20>}, {transform_indices = @transform_3, window_bounds = array<i64: 512, 20>}]} {
    %c0 = arith.constant 0 : index
    %c0_0 = arith.constant 0 : index
    %0 = vector.load %arg1[%c0, %c0_0] : memref<512x4xf32, #tpu.memory_space<vmem>>, vector<512x4xf32>
    %c0_1 = arith.constant 0 : index
    %c0_2 = arith.constant 0 : index
    %1 = vector.load %arg2[%c0_1, %c0_2] : memref<4x20xf32, #tpu.memory_space<vmem>>, vector<4x20xf32>
    %cst = arith.constant dense<0.000000e+00> : vector<512x20xf32>
    %2 = tpu.matmul %0, %1, %cst {dimension_numbers = #tpu.dot_dimension_numbers<[1], [0], [0], [1], [0, 0, 1, 1], [], []>} : vector<512x4xf32>, vector<4x20xf32>, vector<512x20xf32> -> vector<512x20xf32>
    %c0_3 = arith.constant 0 : index
    %c0_4 = arith.constant 0 : index
    %3 = vector.load %arg3[%c0_3, %c0_4] : memref<1x20xf32, #tpu.memory_space<vmem>>, vector<1x20xf32>
    %4 = vector.broadcast %3 : vector<1x20xf32> to vector<512x20xf32>
    %5 = arith.addf %2, %4 : vector<512x20xf32>
    %c0_5 = arith.constant 0 : index
    %c0_6 = arith.constant 0 : index
    %6 = vector.load %arg4[%c0_5, %c0_6] : memref<512x20xf32, #tpu.memory_space<vmem>>, vector<512x20xf32>
    tpu.vector_store %arg4[%c0_5, %c0_6], %5 {strides = array<i32>} : memref<512x20xf32, #tpu.memory_space<vmem>>, vector<512x20xf32>,
    return
  }
  func.func @transform_0(%arg0: i32) -> (i32, i32) {
    %c0_i32 = arith.constant 0 : i32
    %c0_i32_0 = arith.constant 0 : i32
    return %arg0, %c0_i32 : i32, i32
  }
  func.func @transform_1(%arg0: i32) -> (i32, i32) {
    %c0_i32 = arith.constant 0 : i32
    %c0_i32_0 = arith.constant 0 : i32
    %c0_i32_1 = arith.constant 0 : i32
    return %c0_i32, %c0_i32_0 : i32, i32
  }
  func.func @transform_2(%arg0: i32) -> (i32, i32) {
    %c0_i32 = arith.constant 0 : i32
    %c0_i32_0 = arith.constant 0 : i32
    %c0_i32_1 = arith.constant 0 : i32
    return %c0_i32, %c0_i32_0 : i32, i32
  }
  func.func @transform_3(%arg0: i32) -> (i32, i32) {
    %c0_i32 = arith.constant 0 : i32
    %c0_i32_0 = arith.constant 0 : i32
    return %arg0, %c0_i32 : i32, i32
  }
}

</mosaic_0001>

<bundles_post_ra>
// kernel: tpu_custom_call.1
= control target key start
LH: loop header
LB: loop body
LE: loop exit
PB: predicated region body
PF: predicated region fallthrough
CT: control target
= control target key end

     0   :  { %vm276_vm0 = vcmask 1043456   ;;  %vm83_vm1 = vcmask 31744   ;;  %vm489_vm2 = vcmask 162816   ;;  %s1231_s1 = inlined_call_operand.vmem [shape: f32[4,20], index: 1, kind: input, shape index: {}]   ;;  %s1232_s0 = inlined_call_operand.vmem [shape: f32[512,4], index: 0, kind: input, shape index: {}]   ;;  %s1233_s2 = inlined_call_operand.vmem [shape: f32[1,20], index: 2, kind: input, shape index: {}]   ;;  %s1234_s3 = inlined_call_operand.vmem [shape: f32[512,20], index: 3, kind: output, shape index: {}]  }
   0x1   :  { %v78_v0 = vld [vmem:[%s1231_s1] sm:$0xf]  ;;  %v47_v5 = vld [vmem:[%s1232_s0 + $0x108] sm:$0xff]  ;;  %v48_v9 = vld [vmem:[%s1232_s0 + $0x110] sm:$0xff] }
   0x2   :  { %v46_v1 = vld [vmem:[%s1232_s0 + $0x100] sm:$0xff]  ;;  %624 = vmatpush.msk.msra.mxu2 %vm276_vm0, %v78_v0  ;;  %625 = vmatpush.msk.msra.mxu3 %vm276_vm0, %v78_v0  ;;  %v63_v6 = vld [vmem:[%s1232_s0 + $0x188] sm:$0xff]  ;;  %v64_v10 = vld [vmem:[%s1232_s0 + $0x190] sm:$0xff] }
   0x3   :  { %v62_v2 = vld [vmem:[%s1232_s0 + $0x180] sm:$0xff]  ;;  %591 = vmatmul.msk.f32.vlgmr.msra.gmra.mxu2 %vm83_vm1, %v46_v1  ;;  %558 = vmatpush.msk.msra.mxu0 %vm276_vm0, %v78_v0  ;;  %v15_v7 = vld [vmem:[%s1232_s0 + $0x8] sm:$0xff]  ;;  %v16_v11 = vld [vmem:[%s1232_s0 + $0x10] sm:$0xff] }
   0x4   :  { %v14_v3 = vld [vmem:[%s1232_s0] sm:$0xff]  ;;  %607 = vmatmul.msk.f32.vlgmr.msra.gmra.mxu3 %vm83_vm1, %v62_v2  ;;  %623 = vmatpush.msk.msra.mxu1 %vm276_vm0, %v78_v0  ;;  %v31_v8 = vld [vmem:[%s1232_s0 + $0x88] sm:$0xff]  ;;  %v32_v12 = vld [vmem:[%s1232_s0 + $0x90] sm:$0xff] }
   0x5   :  { %v30_v4 = vld [vmem:[%s1232_s0 + $0x80] sm:$0xff]  ;;  %559 = vmatmul.msk.f32.vlgmr.msra.gmra.mxu0 %vm83_vm1, %v14_v3  ;;  %v49_v13 = vld [vmem:[%s1232_s0 + $0x118] sm:$0xff]  ;;  %v51_v21 = vld [vmem:[%s1232_s0 + $0x128] sm:$0xff] }
   0x6   :  { %575 = vmatmul.msk.f32.vlgmr.msra.gmra.mxu1 %vm83_vm1, %v30_v4  ;;  %v65_v14 = vld [vmem:[%s1232_s0 + $0x198] sm:$0xff]  ;;  %v50_v17 = vld [vmem:[%s1232_s0 + $0x120] sm:$0xff]  ;;  %v67_v22 = vld [vmem:[%s1232_s0 + $0x1a8] sm:$0xff] }
   0x7   :  { %v17_v15 = vld [vmem:[%s1232_s0 + $0x18] sm:$0xff]  ;;  %v66_v18 = vld [vmem:[%s1232_s0 + $0x1a0] sm:$0xff]  ;;  %v19_v23 = vld [vmem:[%s1232_s0 + $0x28] sm:$0xff] }
   0x8   :  { %v33_v16 = vld [vmem:[%s1232_s0 + $0x98] sm:$0xff]  ;;  %v18_v19 = vld [vmem:[%s1232_s0 + $0x20] sm:$0xff]  ;;  %v35_v24 = vld [vmem:[%s1232_s0 + $0xa8] sm:$0xff] }
   0x9   :  { %v34_v20 = vld [vmem:[%s1232_s0 + $0xa0] sm:$0xff]  ;;  %v52_v25 = vld [vmem:[%s1232_s0 + $0x130] sm:$0xff]  ;;  %v53_v29 = vld [vmem:[%s1232_s0 + $0x138] sm:$0xff] }
   0xa   :  { %v68_v26 = vld [vmem:[%s1232_s0 + $0x1b0] sm:$0xff]  ;;  %v69_v30 = vld [vmem:[%s1232_s0 + $0x1b8] sm:$0xff]  ;;  %v54_v33 = vld [vmem:[%s1232_s0 + $0x140] sm:$0xff] }
   0xb   :  { %592 = vmatmul.msk.f32.gmra.mxu2 %vm83_vm1, %v47_v5  ;;  %v20_v27 = vld [vmem:[%s1232_s0 + $0x30] sm:$0xff]  ;;  %v21_v31 = vld [vmem:[%s1232_s0 + $0x38] sm:$0xff]  ;;  %v70_v34 = vld [vmem:[%s1232_s0 + $0x1c0] sm:$0xff] }
   0xc   :  { %608 = vmatmul.msk.f32.gmra.mxu3 %vm83_vm1, %v63_v6  ;;  %v36_v28 = vld [vmem:[%s1232_s0 + $0xb0] sm:$0xff]  ;;  %v37_v32 = vld [vmem:[%s1232_s0 + $0xb8] sm:$0xff]  ;;  %v22_v35 = vld [vmem:[%s1232_s0 + $0x40] sm:$0xff] }
   0xd   :  { %560 = vmatmul.msk.f32.gmra.mxu0 %vm83_vm1, %v15_v7  ;;  %v38_v36 = vld [vmem:[%s1232_s0 + $0xc0] sm:$0xff]  ;;  %v55_v37 = vld [vmem:[%s1232_s0 + $0x148] sm:$0xff]  ;;  %v56_v41 = vld [vmem:[%s1232_s0 + $0x150] sm:$0xff] }
   0xe   :  { %576 = vmatmul.msk.f32.gmra.mxu1 %vm83_vm1, %v31_v8  ;;  %v71_v38 = vld [vmem:[%s1232_s0 + $0x1c8] sm:$0xff]  ;;  %v72_v42 = vld [vmem:[%s1232_s0 + $0x1d0] sm:$0xff]  ;;  %v57_v45 = vld [vmem:[%s1232_s0 + $0x158] sm:$0xff] }
   0xf   :  { %v23_v39 = vld [vmem:[%s1232_s0 + $0x48] sm:$0xff]  ;;  %v24_v43 = vld [vmem:[%s1232_s0 + $0x50] sm:$0xff]  ;;  %v73_v46 = vld [vmem:[%s1232_s0 + $0x1d8] sm:$0xff] }
  0x10   :  { %v39_v40 = vld [vmem:[%s1232_s0 + $0xc8] sm:$0xff]  ;;  %v40_v44 = vld [vmem:[%s1232_s0 + $0xd0] sm:$0xff]  ;;  %v25_v47 = vld [vmem:[%s1232_s0 + $0x58] sm:$0xff] }
  0x11   :  { %v41_v48 = vld [vmem:[%s1232_s0 + $0xd8] sm:$0xff]  ;;  %v58_v49 = vld [vmem:[%s1232_s0 + $0x160] sm:$0xff]  ;;  %v59_v53 = vld [vmem:[%s1232_s0 + $0x168] sm:$0xff] }
  0x12   :  { %v74_v50 = vld [vmem:[%s1232_s0 + $0x1e0] sm:$0xff]  ;;  %v75_v54 = vld [vmem:[%s1232_s0 + $0x1e8] sm:$0xff]  ;;  %v60_v57 = vld [vmem:[%s1232_s0 + $0x170] sm:$0xff] }
  0x13   :  { %593 = vmatmul.msk.f32.gmra.mxu2 %vm83_vm1, %v48_v9  ;;  %v26_v51 = vld [vmem:[%s1232_s0 + $0x60] sm:$0xff]  ;;  %v27_v55 = vld [vmem:[%s1232_s0 + $0x68] sm:$0xff]  ;;  %v76_v58 = vld [vmem:[%s1232_s0 + $0x1f0] sm:$0xff] }
  0x14   :  { %609 = vmatmul.msk.f32.gmra.mxu3 %vm83_vm1, %v64_v10  ;;  %v42_v52 = vld [vmem:[%s1232_s0 + $0xe0] sm:$0xff]  ;;  %v43_v56 = vld [vmem:[%s1232_s0 + $0xe8] sm:$0xff]  ;;  %v28_v59 = vld [vmem:[%s1232_s0 + $0x70] sm:$0xff] }
  0x15   :  { %561 = vmatmul.msk.f32.gmra.mxu0 %vm83_vm1, %v16_v11  ;;  %v44_v60 = vld [vmem:[%s1232_s0 + $0xf0] sm:$0xff]  ;;  %v61_v61 = vld [vmem:[%s1232_s0 + $0x178] sm:$0xff]  ;;  %v909_v1 = vld [vmem:[%s1233_s2] ss:$0 sm:$0xff] }
  0x16   :  { %577 = vmatmul.msk.f32.gmra.mxu1 %vm83_vm1, %v32_v12  ;;  %v77_v62 = vld [vmem:[%s1232_s0 + $0x1f8] sm:$0xff] }
  0x17   :  { %v29_v63 = vld [vmem:[%s1232_s0 + $0x78] sm:$0xff] }
  0x18   :  { %v45_v0 = vld [vmem:[%s1232_s0 + $0xf8] sm:$0xff] }
  0x1b   :  { %594 = vmatmul.msk.f32.gmra.mxu2 %vm83_vm1, %v49_v13 }
  0x1c   :  { %610 = vmatmul.msk.f32.gmra.mxu3 %vm83_vm1, %v65_v14 }
  0x1d   :  { %562 = vmatmul.msk.f32.gmra.mxu0 %vm83_vm1, %v17_v15 }
  0x1e   :  { %578 = vmatmul.msk.f32.gmra.mxu1 %vm83_vm1, %v33_v16 }
  0x23   :  { %595 = vmatmul.msk.f32.gmra.mxu2 %vm83_vm1, %v50_v17 }
  0x24   :  { %611 = vmatmul.msk.f32.gmra.mxu3 %vm83_vm1, %v66_v18 }
  0x25   :  { %563 = vmatmul.msk.f32.gmra.mxu0 %vm83_vm1, %v18_v19 }
  0x26   :  { %579 = vmatmul.msk.f32.gmra.mxu1 %vm83_vm1, %v34_v20 }
  0x2b   :  { %596 = vmatmul.msk.f32.gmra.mxu2 %vm83_vm1, %v51_v21 }
  0x2c   :  { %612 = vmatmul.msk.f32.gmra.mxu3 %vm83_vm1, %v67_v22 }
  0x2d   :  { %564 = vmatmul.msk.f32.gmra.mxu0 %vm83_vm1, %v19_v23 }
  0x2e   :  { %580 = vmatmul.msk.f32.gmra.mxu1 %vm83_vm1, %v35_v24 }
  0x33   :  { %597 = vmatmul.msk.f32.gmra.mxu2 %vm83_vm1, %v52_v25 }
  0x34   :  { %613 = vmatmul.msk.f32.gmra.mxu3 %vm83_vm1, %v68_v26 }
  0x35   :  { %565 = vmatmul.msk.f32.gmra.mxu0 %vm83_vm1, %v20_v27 }
  0x36   :  { %581 = vmatmul.msk.f32.gmra.mxu1 %vm83_vm1, %v36_v28 }
  0x3b   :  { %598 = vmatmul.msk.f32.gmra.mxu2 %vm83_vm1, %v53_v29 }
  0x3c   :  { %614 = vmatmul.msk.f32.gmra.mxu3 %vm83_vm1, %v69_v30 }
  0x3d   :  { %566 = vmatmul.msk.f32.gmra.mxu0 %vm83_vm1, %v21_v31 }
  0x3e   :  { %582 = vmatmul.msk.f32.gmra.mxu1 %vm83_vm1, %v37_v32 }
  0x43   :  { %599 = vmatmul.msk.f32.gmra.mxu2 %vm83_vm1, %v54_v33 }
  0x44   :  { %615 = vmatmul.msk.f32.gmra.mxu3 %vm83_vm1, %v70_v34 }
  0x45   :  { %567 = vmatmul.msk.f32.gmra.mxu0 %vm83_vm1, %v22_v35 }
  0x46   :  { %583 = vmatmul.msk.f32.gmra.mxu1 %vm83_vm1, %v38_v36 }
  0x4b   :  { %600 = vmatmul.msk.f32.gmra.mxu2 %vm83_vm1, %v55_v37 }
  0x4c   :  { %616 = vmatmul.msk.f32.gmra.mxu3 %vm83_vm1, %v71_v38 }
  0x4d   :  { %568 = vmatmul.msk.f32.gmra.mxu0 %vm83_vm1, %v23_v39 }
  0x4e   :  { %584 = vmatmul.msk.f32.gmra.mxu1 %vm83_vm1, %v39_v40 }
  0x53   :  { %601 = vmatmul.msk.f32.gmra.mxu2 %vm83_vm1, %v56_v41 }
  0x54   :  { %617 = vmatmul.msk.f32.gmra.mxu3 %vm83_vm1, %v72_v42 }
  0x55   :  { %569 = vmatmul.msk.f32.gmra.mxu0 %vm83_vm1, %v24_v43 }
  0x56   :  { %585 = vmatmul.msk.f32.gmra.mxu1 %vm83_vm1, %v40_v44 }
  0x5b   :  { %602 = vmatmul.msk.f32.gmra.mxu2 %vm83_vm1, %v57_v45 }
  0x5c   :  { %618 = vmatmul.msk.f32.gmra.mxu3 %vm83_vm1, %v73_v46 }
  0x5d   :  { %570 = vmatmul.msk.f32.gmra.mxu0 %vm83_vm1, %v25_v47 }
  0x5e   :  { %586 = vmatmul.msk.f32.gmra.mxu1 %vm83_vm1, %v41_v48 }
  0x63   :  { %603 = vmatmul.msk.f32.gmra.mxu2 %vm83_vm1, %v58_v49 }
  0x64   :  { %619 = vmatmul.msk.f32.gmra.mxu3 %vm83_vm1, %v74_v50 }
  0x65   :  { %571 = vmatmul.msk.f32.gmra.mxu0 %vm83_vm1, %v26_v51 }
  0x66   :  { %587 = vmatmul.msk.f32.gmra.mxu1 %vm83_vm1, %v42_v52 }
  0x6b   :  { %604 = vmatmul.msk.f32.gmra.mxu2 %vm83_vm1, %v59_v53 }
  0x6c   :  { %620 = vmatmul.msk.f32.gmra.mxu3 %vm83_vm1, %v75_v54 }
  0x6d   :  { %572 = vmatmul.msk.f32.gmra.mxu0 %vm83_vm1, %v27_v55 }
  0x6e   :  { %588 = vmatmul.msk.f32.gmra.mxu1 %vm83_vm1, %v43_v56 }
  0x73   :  { %605 = vmatmul.msk.f32.gmra.mxu2 %vm83_vm1, %v60_v57 }
  0x74   :  { %621 = vmatmul.msk.f32.gmra.mxu3 %vm83_vm1, %v76_v58 }
  0x75   :  { %573 = vmatmul.msk.f32.gmra.mxu0 %vm83_vm1, %v28_v59 }
  0x76   :  { %589 = vmatmul.msk.f32.gmra.mxu1 %vm83_vm1, %v44_v60 }
  0x7b   :  { %606 = vmatmul.msk.f32.gmra.mxu2 %vm83_vm1, %v61_v61 }
  0x7c   :  { %622 = vmatmul.msk.f32.gmra.mxu3 %vm83_vm1, %v77_v62 }
  0x7d   :  { %574 = vmatmul.msk.f32.gmra.mxu0 %vm83_vm1, %v29_v63 }
  0x7e   :  { %590 = vmatmul.msk.f32.gmra.mxu1 %vm83_vm1, %v45_v0 }
  0x82   :  { %v297_v2 = vpop.f32.mrf.mxu0 }
  0x83   :  { %v345_v3 = vpop.f32.mrf.mxu1  ;;  %v298_v4 = vadd.f32 %v909_v1, %v297_v2 }
  0x84   :  { %v346_v5 = vadd.f32 %v909_v1, %v345_v3 }
  0x85   :  { %490 = vst.msk [vmem:[%s1234_s3] sm:$0xff] %vm489_vm2, %v298_v4 }
  0x86   :  { %506 = vst.msk [vmem:[%s1234_s3 + $0x80] sm:$0xff] %vm489_vm2, %v346_v5  ;;  %v393_v6 = vpop.f32.mrf.mxu2 }
  0x87   :  { %v441_v7 = vpop.f32.mrf.mxu3  ;;  %v394_v8 = vadd.f32 %v909_v1, %v393_v6 }
  0x88   :  { %v442_v9 = vadd.f32 %v909_v1, %v441_v7 }
  0x89   :  { %522 = vst.msk [vmem:[%s1234_s3 + $0x100] sm:$0xff] %vm489_vm2, %v394_v8 }
  0x8a   :  { %538 = vst.msk [vmem:[%s1234_s3 + $0x180] sm:$0xff] %vm489_vm2, %v442_v9  ;;  %v300_v10 = vpop.f32.mrf.mxu0 }
  0x8b   :  { %v348_v11 = vpop.f32.mrf.mxu1  ;;  %v301_v12 = vadd.f32 %v909_v1, %v300_v10 }
  0x8c   :  { %v349_v13 = vadd.f32 %v909_v1, %v348_v11 }
  0x8d   :  { %491 = vst.msk [vmem:[%s1234_s3 + $0x8] sm:$0xff] %vm489_vm2, %v301_v12 }
  0x8e   :  { %507 = vst.msk [vmem:[%s1234_s3 + $0x88] sm:$0xff] %vm489_vm2, %v349_v13  ;;  %v396_v14 = vpop.f32.mrf.mxu2 }
  0x8f   :  { %v444_v15 = vpop.f32.mrf.mxu3  ;;  %v397_v16 = vadd.f32 %v909_v1, %v396_v14 }
  0x90   :  { %v445_v17 = vadd.f32 %v909_v1, %v444_v15 }
  0x91   :  { %523 = vst.msk [vmem:[%s1234_s3 + $0x108] sm:$0xff] %vm489_vm2, %v397_v16 }
  0x92   :  { %539 = vst.msk [vmem:[%s1234_s3 + $0x188] sm:$0xff] %vm489_vm2, %v445_v17  ;;  %v303_v18 = vpop.f32.mrf.mxu0 }
  0x93   :  { %v351_v19 = vpop.f32.mrf.mxu1  ;;  %v304_v20 = vadd.f32 %v909_v1, %v303_v18 }
  0x94   :  { %v352_v21 = vadd.f32 %v909_v1, %v351_v19 }
  0x95   :  { %492 = vst.msk [vmem:[%s1234_s3 + $0x10] sm:$0xff] %vm489_vm2, %v304_v20 }
  0x96   :  { %508 = vst.msk [vmem:[%s1234_s3 + $0x90] sm:$0xff] %vm489_vm2, %v352_v21  ;;  %v399_v22 = vpop.f32.mrf.mxu2 }
  0x97   :  { %v447_v23 = vpop.f32.mrf.mxu3  ;;  %v400_v24 = vadd.f32 %v909_v1, %v399_v22 }
  0x98   :  { %v448_v25 = vadd.f32 %v909_v1, %v447_v23 }
  0x99   :  { %524 = vst.msk [vmem:[%s1234_s3 + $0x110] sm:$0xff] %vm489_vm2, %v400_v24 }
  0x9a   :  { %540 = vst.msk [vmem:[%s1234_s3 + $0x190] sm:$0xff] %vm489_vm2, %v448_v25  ;;  %v306_v26 = vpop.f32.mrf.mxu0 }
  0x9b   :  { %v354_v27 = vpop.f32.mrf.mxu1  ;;  %v307_v28 = vadd.f32 %v909_v1, %v306_v26 }
  0x9c   :  { %v355_v29 = vadd.f32 %v909_v1, %v354_v27 }
  0x9d   :  { %493 = vst.msk [vmem:[%s1234_s3 + $0x18] sm:$0xff] %vm489_vm2, %v307_v28 }
  0x9e   :  { %509 = vst.msk [vmem:[%s1234_s3 + $0x98] sm:$0xff] %vm489_vm2, %v355_v29  ;;  %v402_v30 = vpop.f32.mrf.mxu2 }
  0x9f   :  { %v450_v31 = vpop.f32.mrf.mxu3  ;;  %v403_v32 = vadd.f32 %v909_v1, %v402_v30 }
  0xa0   :  { %v451_v33 = vadd.f32 %v909_v1, %v450_v31 }
  0xa1   :  { %525 = vst.msk [vmem:[%s1234_s3 + $0x118] sm:$0xff] %vm489_vm2, %v403_v32 }
  0xa2   :  { %541 = vst.msk [vmem:[%s1234_s3 + $0x198] sm:$0xff] %vm489_vm2, %v451_v33  ;;  %v309_v34 = vpop.f32.mrf.mxu0 }
  0xa3   :  { %v357_v35 = vpop.f32.mrf.mxu1  ;;  %v310_v36 = vadd.f32 %v909_v1, %v309_v34 }
  0xa4   :  { %v358_v37 = vadd.f32 %v909_v1, %v357_v35 }
  0xa5   :  { %494 = vst.msk [vmem:[%s1234_s3 + $0x20] sm:$0xff] %vm489_vm2, %v310_v36 }
  0xa6   :  { %510 = vst.msk [vmem:[%s1234_s3 + $0xa0] sm:$0xff] %vm489_vm2, %v358_v37  ;;  %v405_v38 = vpop.f32.mrf.mxu2 }
  0xa7   :  { %v453_v39 = vpop.f32.mrf.mxu3  ;;  %v406_v40 = vadd.f32 %v909_v1, %v405_v38 }
  0xa8   :  { %v454_v41 = vadd.f32 %v909_v1, %v453_v39 }
  0xa9   :  { %526 = vst.msk [vmem:[%s1234_s3 + $0x120] sm:$0xff] %vm489_vm2, %v406_v40 }
  0xaa   :  { %542 = vst.msk [vmem:[%s1234_s3 + $0x1a0] sm:$0xff] %vm489_vm2, %v454_v41  ;;  %v312_v42 = vpop.f32.mrf.mxu0 }
  0xab   :  { %v360_v43 = vpop.f32.mrf.mxu1  ;;  %v313_v44 = vadd.f32 %v909_v1, %v312_v42 }
  0xac   :  { %v361_v45 = vadd.f32 %v909_v1, %v360_v43 }
  0xad   :  { %495 = vst.msk [vmem:[%s1234_s3 + $0x28] sm:$0xff] %vm489_vm2, %v313_v44 }
  0xae   :  { %511 = vst.msk [vmem:[%s1234_s3 + $0xa8] sm:$0xff] %vm489_vm2, %v361_v45  ;;  %v408_v46 = vpop.f32.mrf.mxu2 }
  0xaf   :  { %v456_v47 = vpop.f32.mrf.mxu3  ;;  %v409_v48 = vadd.f32 %v909_v1, %v408_v46 }
  0xb0   :  { %v457_v49 = vadd.f32 %v909_v1, %v456_v47 }
  0xb1   :  { %527 = vst.msk [vmem:[%s1234_s3 + $0x128] sm:$0xff] %vm489_vm2, %v409_v48 }
  0xb2   :  { %543 = vst.msk [vmem:[%s1234_s3 + $0x1a8] sm:$0xff] %vm489_vm2, %v457_v49  ;;  %v315_v50 = vpop.f32.mrf.mxu0 }
  0xb3   :  { %v363_v51 = vpop.f32.mrf.mxu1  ;;  %v316_v52 = vadd.f32 %v909_v1, %v315_v50 }
  0xb4   :  { %v364_v53 = vadd.f32 %v909_v1, %v363_v51 }
  0xb5   :  { %496 = vst.msk [vmem:[%s1234_s3 + $0x30] sm:$0xff] %vm489_vm2, %v316_v52 }
  0xb6   :  { %512 = vst.msk [vmem:[%s1234_s3 + $0xb0] sm:$0xff] %vm489_vm2, %v364_v53  ;;  %v411_v54 = vpop.f32.mrf.mxu2 }
  0xb7   :  { %v459_v55 = vpop.f32.mrf.mxu3  ;;  %v412_v56 = vadd.f32 %v909_v1, %v411_v54 }
  0xb8   :  { %v460_v57 = vadd.f32 %v909_v1, %v459_v55 }
  0xb9   :  { %528 = vst.msk [vmem:[%s1234_s3 + $0x130] sm:$0xff] %vm489_vm2, %v412_v56 }
  0xba   :  { %544 = vst.msk [vmem:[%s1234_s3 + $0x1b0] sm:$0xff] %vm489_vm2, %v460_v57  ;;  %v318_v58 = vpop.f32.mrf.mxu0 }
  0xbb   :  { %v366_v59 = vpop.f32.mrf.mxu1  ;;  %v319_v60 = vadd.f32 %v909_v1, %v318_v58 }
  0xbc   :  { %v367_v61 = vadd.f32 %v909_v1, %v366_v59 }
  0xbd   :  { %497 = vst.msk [vmem:[%s1234_s3 + $0x38] sm:$0xff] %vm489_vm2, %v319_v60 }
  0xbe   :  { %513 = vst.msk [vmem:[%s1234_s3 + $0xb8] sm:$0xff] %vm489_vm2, %v367_v61  ;;  %v414_v62 = vpop.f32.mrf.mxu2 }
  0xbf   :  { %v462_v63 = vpop.f32.mrf.mxu3  ;;  %v415_v0 = vadd.f32 %v909_v1, %v414_v62 }
  0xc0   :  { %v463_v2 = vadd.f32 %v909_v1, %v462_v63 }
  0xc1   :  { %529 = vst.msk [vmem:[%s1234_s3 + $0x138] sm:$0xff] %vm489_vm2, %v415_v0 }
  0xc2   :  { %545 = vst.msk [vmem:[%s1234_s3 + $0x1b8] sm:$0xff] %vm489_vm2, %v463_v2  ;;  %v321_v3 = vpop.f32.mrf.mxu0 }
  0xc3   :  { %v369_v4 = vpop.f32.mrf.mxu1  ;;  %v322_v5 = vadd.f32 %v909_v1, %v321_v3 }
  0xc4   :  { %v370_v6 = vadd.f32 %v909_v1, %v369_v4 }
  0xc5   :  { %498 = vst.msk [vmem:[%s1234_s3 + $0x40] sm:$0xff] %vm489_vm2, %v322_v5 }
  0xc6   :  { %514 = vst.msk [vmem:[%s1234_s3 + $0xc0] sm:$0xff] %vm489_vm2, %v370_v6  ;;  %v417_v7 = vpop.f32.mrf.mxu2 }
  0xc7   :  { %v465_v8 = vpop.f32.mrf.mxu3  ;;  %v418_v9 = vadd.f32 %v909_v1, %v417_v7 }
  0xc8   :  { %v466_v10 = vadd.f32 %v909_v1, %v465_v8 }
  0xc9   :  { %530 = vst.msk [vmem:[%s1234_s3 + $0x140] sm:$0xff] %vm489_vm2, %v418_v9 }
  0xca   :  { %546 = vst.msk [vmem:[%s1234_s3 + $0x1c0] sm:$0xff] %vm489_vm2, %v466_v10  ;;  %v324_v11 = vpop.f32.mrf.mxu0 }
  0xcb   :  { %v372_v12 = vpop.f32.mrf.mxu1  ;;  %v325_v13 = vadd.f32 %v909_v1, %v324_v11 }
  0xcc   :  { %v373_v14 = vadd.f32 %v909_v1, %v372_v12 }
  0xcd   :  { %499 = vst.msk [vmem:[%s1234_s3 + $0x48] sm:$0xff] %vm489_vm2, %v325_v13 }
  0xce   :  { %515 = vst.msk [vmem:[%s1234_s3 + $0xc8] sm:$0xff] %vm489_vm2, %v373_v14  ;;  %v420_v15 = vpop.f32.mrf.mxu2 }
  0xcf   :  { %v468_v16 = vpop.f32.mrf.mxu3  ;;  %v421_v17 = vadd.f32 %v909_v1, %v420_v15 }
  0xd0   :  { %v469_v18 = vadd.f32 %v909_v1, %v468_v16 }
  0xd1   :  { %531 = vst.msk [vmem:[%s1234_s3 + $0x148] sm:$0xff] %vm489_vm2, %v421_v17 }
  0xd2   :  { %547 = vst.msk [vmem:[%s1234_s3 + $0x1c8] sm:$0xff] %vm489_vm2, %v469_v18  ;;  %v327_v19 = vpop.f32.mrf.mxu0 }
  0xd3   :  { %v375_v20 = vpop.f32.mrf.mxu1  ;;  %v328_v21 = vadd.f32 %v909_v1, %v327_v19 }
  0xd4   :  { %v376_v22 = vadd.f32 %v909_v1, %v375_v20 }
  0xd5   :  { %500 = vst.msk [vmem:[%s1234_s3 + $0x50] sm:$0xff] %vm489_vm2, %v328_v21 }
  0xd6   :  { %516 = vst.msk [vmem:[%s1234_s3 + $0xd0] sm:$0xff] %vm489_vm2, %v376_v22  ;;  %v423_v23 = vpop.f32.mrf.mxu2 }
  0xd7   :  { %v471_v24 = vpop.f32.mrf.mxu3  ;;  %v424_v25 = vadd.f32 %v909_v1, %v423_v23 }
  0xd8   :  { %v472_v26 = vadd.f32 %v909_v1, %v471_v24 }
  0xd9   :  { %532 = vst.msk [vmem:[%s1234_s3 + $0x150] sm:$0xff] %vm489_vm2, %v424_v25 }
  0xda   :  { %548 = vst.msk [vmem:[%s1234_s3 + $0x1d0] sm:$0xff] %vm489_vm2, %v472_v26  ;;  %v330_v27 = vpop.f32.mrf.mxu0 }
  0xdb   :  { %v378_v28 = vpop.f32.mrf.mxu1  ;;  %v331_v29 = vadd.f32 %v909_v1, %v330_v27 }
  0xdc   :  { %v379_v30 = vadd.f32 %v909_v1, %v378_v28 }
  0xdd   :  { %501 = vst.msk [vmem:[%s1234_s3 + $0x58] sm:$0xff] %vm489_vm2, %v331_v29 }
  0xde   :  { %517 = vst.msk [vmem:[%s1234_s3 + $0xd8] sm:$0xff] %vm489_vm2, %v379_v30  ;;  %v426_v31 = vpop.f32.mrf.mxu2 }
  0xdf   :  { %v474_v32 = vpop.f32.mrf.mxu3  ;;  %v427_v33 = vadd.f32 %v909_v1, %v426_v31 }
  0xe0   :  { %v475_v34 = vadd.f32 %v909_v1, %v474_v32 }
  0xe1   :  { %533 = vst.msk [vmem:[%s1234_s3 + $0x158] sm:$0xff] %vm489_vm2, %v427_v33 }
  0xe2   :  { %549 = vst.msk [vmem:[%s1234_s3 + $0x1d8] sm:$0xff] %vm489_vm2, %v475_v34  ;;  %v333_v35 = vpop.f32.mrf.mxu0 }
  0xe3   :  { %v381_v36 = vpop.f32.mrf.mxu1  ;;  %v334_v37 = vadd.f32 %v909_v1, %v333_v35 }
  0xe4   :  { %v382_v38 = vadd.f32 %v909_v1, %v381_v36 }
  0xe5   :  { %502 = vst.msk [vmem:[%s1234_s3 + $0x60] sm:$0xff] %vm489_vm2, %v334_v37 }
  0xe6   :  { %518 = vst.msk [vmem:[%s1234_s3 + $0xe0] sm:$0xff] %vm489_vm2, %v382_v38  ;;  %v429_v39 = vpop.f32.mrf.mxu2 }
  0xe7   :  { %v477_v40 = vpop.f32.mrf.mxu3  ;;  %v430_v41 = vadd.f32 %v909_v1, %v429_v39 }
  0xe8   :  { %v478_v42 = vadd.f32 %v909_v1, %v477_v40 }
  0xe9   :  { %534 = vst.msk [vmem:[%s1234_s3 + $0x160] sm:$0xff] %vm489_vm2, %v430_v41 }
  0xea   :  { %550 = vst.msk [vmem:[%s1234_s3 + $0x1e0] sm:$0xff] %vm489_vm2, %v478_v42  ;;  %v336_v43 = vpop.f32.mrf.mxu0 }
  0xeb   :  { %v384_v44 = vpop.f32.mrf.mxu1  ;;  %v337_v45 = vadd.f32 %v909_v1, %v336_v43 }
  0xec   :  { %v385_v46 = vadd.f32 %v909_v1, %v384_v44 }
  0xed   :  { %503 = vst.msk [vmem:[%s1234_s3 + $0x68] sm:$0xff] %vm489_vm2, %v337_v45 }
  0xee   :  { %519 = vst.msk [vmem:[%s1234_s3 + $0xe8] sm:$0xff] %vm489_vm2, %v385_v46  ;;  %v432_v47 = vpop.f32.mrf.mxu2 }
  0xef   :  { %v480_v48 = vpop.f32.mrf.mxu3  ;;  %v433_v49 = vadd.f32 %v909_v1, %v432_v47 }
  0xf0   :  { %v481_v50 = vadd.f32 %v909_v1, %v480_v48 }
  0xf1   :  { %535 = vst.msk [vmem:[%s1234_s3 + $0x168] sm:$0xff] %vm489_vm2, %v433_v49 }
  0xf2   :  { %551 = vst.msk [vmem:[%s1234_s3 + $0x1e8] sm:$0xff] %vm489_vm2, %v481_v50  ;;  %v339_v51 = vpop.f32.mrf.mxu0 }
  0xf3   :  { %v387_v52 = vpop.f32.mrf.mxu1  ;;  %v340_v53 = vadd.f32 %v909_v1, %v339_v51 }
  0xf4   :  { %v388_v54 = vadd.f32 %v909_v1, %v387_v52 }
  0xf5   :  { %504 = vst.msk [vmem:[%s1234_s3 + $0x70] sm:$0xff] %vm489_vm2, %v340_v53 }
  0xf6   :  { %520 = vst.msk [vmem:[%s1234_s3 + $0xf0] sm:$0xff] %vm489_vm2, %v388_v54  ;;  %v435_v55 = vpop.f32.mrf.mxu2 }
  0xf7   :  { %v483_v56 = vpop.f32.mrf.mxu3  ;;  %v436_v57 = vadd.f32 %v909_v1, %v435_v55 }
  0xf8   :  { %v484_v58 = vadd.f32 %v909_v1, %v483_v56 }
  0xf9   :  { %536 = vst.msk [vmem:[%s1234_s3 + $0x170] sm:$0xff] %vm489_vm2, %v436_v57 }
  0xfa   :  { %552 = vst.msk [vmem:[%s1234_s3 + $0x1f0] sm:$0xff] %vm489_vm2, %v484_v58  ;;  %v342_v59 = vpop.f32.mrf.mxu0 }
  0xfb   :  { %v390_v60 = vpop.f32.mrf.mxu1  ;;  %v343_v61 = vadd.f32 %v909_v1, %v342_v59 }
  0xfc   :  { %v391_v62 = vadd.f32 %v909_v1, %v390_v60 }
  0xfd   :  { %505 = vst.msk [vmem:[%s1234_s3 + $0x78] sm:$0xff] %vm489_vm2, %v343_v61 }
  0xfe   :  { %521 = vst.msk [vmem:[%s1234_s3 + $0xf8] sm:$0xff] %vm489_vm2, %v391_v62  ;;  %v438_v63 = vpop.f32.mrf.mxu2 }
  0xff   :  { %v486_v0 = vpop.f32.mrf.mxu3  ;;  %v439_v2 = vadd.f32 %v909_v1, %v438_v63 }
 0x100   :  { %v487_v3 = vadd.f32 %v909_v1, %v486_v0 }
 0x101   :  { %537 = vst.msk [vmem:[%s1234_s3 + $0x178] sm:$0xff] %vm489_vm2, %v439_v2 }
 0x102   :  { %553 = vst.msk [vmem:[%s1234_s3 + $0x1f8] sm:$0xff] %vm489_vm2, %v487_v3 }

</bundles_post_ra>
